<compile_context>
chip_gen: v6e
topology: v6e:2x2x1
jax: 0.10.0
libtpu: 0.0.40
codegen_flags: <defaults>
</compile_context>

<pallas_src>
import jax
import jax.numpy as jnp
from jax.experimental import pallas as pl
from jax.experimental.pallas import tpu as pltpu


def mapnet_kernel(x_ref, w1_ref, w2_ref, o_ref, acc_ref):
    # x_ref: (tm, H)  w1_ref: (H, tk)  w2_ref: (tk, H)  o_ref: (tm, H)
    # acc_ref: (tm, H) f32 accumulator resident across the M (k) grid axis.
    k = pl.program_id(1)

    @pl.when(k == 0)
    def _():
        # Seed the accumulator with the residual (MapNet.forward: delta + doc_rep).
        acc_ref[...] = x_ref[...].astype(jnp.float32)

    # Up-projection slab on the MXU, f32 accumulation.
    h = jnp.dot(x_ref[...], w1_ref[...], preferred_element_type=jnp.float32)
    # TODO(synk): PlugD's MLP activation is not shown in the snippet; GELU assumed.
    h = jax.nn.gelu(h)  # f32 math (v5e VPU/EUP have no bf16)
    # Down-projection of this M-slab; cast back to the weight dtype so the
    # bf16 MXU path is engaged when inputs are bf16 (f32 accumulate).
    acc_ref[...] += jnp.dot(h.astype(w2_ref.dtype), w2_ref[...],
                            preferred_element_type=jnp.float32)

    @pl.when(k == pl.num_programs(1) - 1)
    def _():
        o_ref[...] = acc_ref[...].astype(o_ref.dtype)


def _pick_tiles(rows, H, M, xbytes, wbytes, budget=48 << 20):
    """Pick (row tile, intermediate tile) so the working set fits VMEM."""
    # -- M (intermediate) tile: bounds weight residency + GELU intermediate.
    #    Require tk | M so no padded (garbage) weight columns enter the matmul.
    tk = M  # fallback: whole intermediate dim resident (always legal)
    for cand in (2048, 1536, 1024, 768, 512, 384, 256, 128):
        if M >= cand and M % cand == 0 and 4 * H * cand * wbytes <= budget // 2:
            tk = cand
            break
    w_foot = 4 * H * tk * wbytes          # W1 + W2 tiles, double buffered
    # -- row tile: biggest that fits the remaining budget, MXU/lane friendly.
    rest = max(budget - w_foot, 1 << 20)
    per_row = (4 * H * xbytes             # x + out tiles, double buffered
               + 4 * H                    # f32 accumulator
               + 4 * tk)                  # f32 GELU intermediate
    tm = max(rest // per_row, 8)
    if tm >= rows:
        tm = rows                         # single block == full dim (always legal)
    else:
        tm = min(tm, 1024)
        tm = max((tm // 128) * 128, 8)    # multiple of 128 keeps the MXU full
    return int(tm), int(tk)


def mapnet_forward(doc_rep, w1, w2):
    """doc_plug = MLP(doc_rep) + doc_rep   (mask is unused, as in MapNet)."""
    B, S, H = doc_rep.shape
    Hw, M = w1.shape
    assert Hw == H and w2.shape == (M, H)
    rows = B * S
    x = doc_rep.reshape(rows, H)

    xbytes = x.dtype.itemsize
    wbytes = w1.dtype.itemsize
    tm, tk = _pick_tiles(rows, H, M, xbytes, wbytes)
    grid = (pl.cdiv(rows, tm), pl.cdiv(M, tk))

    # Explicit VMEM budget: double-buffered tiles + accumulator + headroom,
    # capped so it also fits v7x's 64 MiB per-TC VMEM.
    need = (4 * H * tk * wbytes           # weight tiles, double buffered
            + 4 * tm * H * xbytes         # x + out tiles, double buffered
            + 4 * tm * H                  # f32 accumulator
            + 4 * tm * tk)                # f32 GELU intermediate
    vmem_limit = int(min(max(need + (8 << 20), 32 << 20), 64 << 20))

    cost = pl.CostEstimate(
        flops=4 * rows * H * M,                       # two matmuls
        transcendentals=rows * M,                     # GELU
        bytes_accessed=2 * rows * H * xbytes + 2 * H * M * wbytes,
    )

    out = pl.pallas_call(
        mapnet_kernel,
        out_shape=jax.ShapeDtypeStruct((rows, H), doc_rep.dtype),
        grid_spec=pltpu.PrefetchScalarGridSpec(
            num_scalar_prefetch=0,
            grid=grid,
            in_specs=[
                pl.BlockSpec((tm, H), lambda i, k: (i, 0)),   # activations (resident across k)
                pl.BlockSpec((H, tk), lambda i, k: (0, k)),   # W1 M-slab
                pl.BlockSpec((tk, H), lambda i, k: (k, 0)),   # W2 M-slab
            ],
            out_specs=pl.BlockSpec((tm, H), lambda i, k: (i, 0)),
            scratch_shapes=[pltpu.VMEM((tm, H), jnp.float32)],
        ),
        compiler_params=pltpu.CompilerParams(
            dimension_semantics=("parallel", "arbitrary"),
            vmem_limit_bytes=vmem_limit,
        ),
        cost_estimate=cost,
    )(x, w1, w2)

    return out.reshape(B, S, H)


def hyperplugd_generate_doc_plug(last_hidden, attention_mask, w1, w2):
    # HyperPlugD.generate_doc_plug: doc_plug = doc_plug_mapper(last_hidden, mask)
    # (mask is accepted but unused inside MapNet.forward)
    # TODO(synk): doc_plug_encoder (DeltaT5OnlyEnc) and backbone (DeltaT5) are
    # pretrained transformer stacks external to this module; not implemented.
    doc_plug = mapnet_forward(last_hidden, w1, w2)
    return doc_plug, last_hidden


if __name__ == "__main__":
    key = jax.random.PRNGKey(0)
    B, S, H = 2, 8, 128           # batch, ctx seq len, hidden_size
    MID = int(H * 2)              # MapNet mid_ratio = 2

    k_x, k_w1, k_w2 = jax.random.split(key, 3)
    # "last_hidden" stands in for doc_plug_encoder output (the ctx representation)
    last_hidden = jax.random.normal(k_x, (B, S, H), dtype=jnp.float32)
    attention_mask = jnp.ones((B, S), dtype=jnp.float32)

    # Deterministic parameter init, std=0.02 (as in MLP(init_std=0.02, bias=False))
    w1 = 0.02 * jax.random.normal(k_w1, (H, MID), dtype=jnp.float32)
    w2 = 0.02 * jax.random.normal(k_w2, (MID, H), dtype=jnp.float32)

    # f32 path: tight correctness check against a pure-JAX reference.
    doc_plug, _ = hyperplugd_generate_doc_plug(last_hidden, attention_mask, w1, w2)
    doc_plug = jax.block_until_ready(doc_plug)
    ref = last_hidden + jax.nn.gelu(last_hidden @ w1) @ w2
    assert jnp.allclose(doc_plug, ref, atol=1e-5, rtol=1e-5)

    # bf16 data path: halved HBM traffic, bf16 MXU inputs, f32 accumulation.
    xb = last_hidden.astype(jnp.bfloat16)
    w1b, w2b = w1.astype(jnp.bfloat16), w2.astype(jnp.bfloat16)
    doc_plug_bf16, _ = hyperplugd_generate_doc_plug(xb, attention_mask, w1b, w2b)
    doc_plug_bf16 = jax.block_until_ready(doc_plug_bf16)
    ref_bf16 = (xb.astype(jnp.float32)
                + jax.nn.gelu(xb.astype(jnp.float32) @ w1b.astype(jnp.float32))
                @ w2b.astype(jnp.float32))
    assert jnp.allclose(doc_plug_bf16.astype(jnp.float32), ref_bf16,
                        atol=5e-2, rtol=5e-2)

    print("KERNEL_OK")
</pallas_src>

<mosaic_0001>
module attributes {stable_mosaic.version = 11 : i64} {
  func.func @mapnet_kernel(%arg0: i32, %arg1: i32, %arg2: memref<16x128xf32, #tpu.memory_space<vmem>>, %arg3: memref<128x256xf32, #tpu.memory_space<vmem>>, %arg4: memref<256x128xf32, #tpu.memory_space<vmem>>, %arg5: memref<16x128xf32, #tpu.memory_space<vmem>>, %arg6: memref<16x128xf32, #tpu.memory_space<vmem>>) attributes {dimension_semantics = [#tpu.dimension_semantics<parallel>, #tpu.dimension_semantics<arbitrary>], iteration_bounds = array<i64: 1, 1>, scalar_prefetch = 0 : i64, scratch_operands = 1 : i64, tpu.core_type = #tpu.core_type<tc>, window_params = [{transform_indices = @transform_0, window_bounds = array<i64: 16, 128>}, {transform_indices = @transform_1, window_bounds = array<i64: 128, 256>}, {transform_indices = @transform_2, window_bounds = array<i64: 256, 128>}, {transform_indices = @transform_3, window_bounds = array<i64: 16, 128>}]} {
    %c0_i32 = arith.constant 0 : i32
    %0 = arith.cmpi eq, %arg1, %c0_i32 : i32
    %1 = arith.extui %0 : i1 to i32
    %c0_i32_0 = arith.constant 0 : i32
    %2 = arith.cmpi ne, %1, %c0_i32_0 : i32
    scf.if %2 {
      %c0_17 = arith.constant 0 : index
      %c0_18 = arith.constant 0 : index
      %27 = vector.load %arg2[%c0_17, %c0_18] : memref<16x128xf32, #tpu.memory_space<vmem>>, vector<16x128xf32>
      %c0_19 = arith.constant 0 : index
      %c0_20 = arith.constant 0 : index
      %28 = vector.load %arg6[%c0_19, %c0_20] : memref<16x128xf32, #tpu.memory_space<vmem>>, vector<16x128xf32>
      tpu.vector_store %arg6[%c0_19, %c0_20], %27 {strides = array<i32>} : memref<16x128xf32, #tpu.memory_space<vmem>>, vector<16x128xf32>,
    } else {
    }
    %c0 = arith.constant 0 : index
    %c0_1 = arith.constant 0 : index
    %3 = vector.load %arg2[%c0, %c0_1] : memref<16x128xf32, #tpu.memory_space<vmem>>, vector<16x128xf32>
    %c0_2 = arith.constant 0 : index
    %c0_3 = arith.constant 0 : index
    %4 = vector.load %arg3[%c0_2, %c0_3] : memref<128x256xf32, #tpu.memory_space<vmem>>, vector<128x256xf32>
    %cst = arith.constant dense<0.000000e+00> : vector<16x256xf32>
    %5 = tpu.matmul %3, %4, %cst {dimension_numbers = #tpu.dot_dimension_numbers<[1], [0], [0], [1], [0, 0, 1, 1], [], []>} : vector<16x128xf32>, vector<128x256xf32>, vector<16x256xf32> -> vector<16x256xf32>
    %6 = arith.mulf %5, %5 : vector<16x256xf32>
    %7 = arith.mulf %5, %6 : vector<16x256xf32>
    %cst_4 = arith.constant 4.471500e-02 : f32
    %8 = vector.broadcast %cst_4 : f32 to vector<16x256xf32>
    %9 = arith.mulf %8, %7 : vector<16x256xf32>
    %10 = arith.addf %5, %9 : vector<16x256xf32>
    %cst_5 = arith.constant 0.797884583 : f32
    %11 = vector.broadcast %cst_5 : f32 to vector<16x256xf32>
    %12 = arith.mulf %11, %10 : vector<16x256xf32>
    %13 = math.tanh %12 : vector<16x256xf32>
    %cst_6 = arith.constant 1.000000e+00 : f32
    %14 = vector.broadcast %cst_6 : f32 to vector<16x256xf32>
    %15 = arith.addf %14, %13 : vector<16x256xf32>
    %cst_7 = arith.constant 5.000000e-01 : f32
    %16 = vector.broadcast %cst_7 : f32 to vector<16x256xf32>
    %17 = arith.mulf %16, %15 : vector<16x256xf32>
    %18 = arith.mulf %5, %17 : vector<16x256xf32>
    %c0_8 = arith.constant 0 : index
    %c0_9 = arith.constant 0 : index
    %19 = vector.load %arg6[%c0_8, %c0_9] : memref<16x128xf32, #tpu.memory_space<vmem>>, vector<16x128xf32>
    %c0_10 = arith.constant 0 : index
    %c0_11 = arith.constant 0 : index
    %20 = vector.load %arg4[%c0_10, %c0_11] : memref<256x128xf32, #tpu.memory_space<vmem>>, vector<256x128xf32>
    %cst_12 = arith.constant dense<0.000000e+00> : vector<16x128xf32>
    %21 = tpu.matmul %18, %20, %cst_12 {dimension_numbers = #tpu.dot_dimension_numbers<[1], [0], [0], [1], [0, 0, 1, 1], [], []>} : vector<16x256xf32>, vector<256x128xf32>, vector<16x128xf32> -> vector<16x128xf32>
    %22 = arith.addf %19, %21 : vector<16x128xf32>
    %c0_13 = arith.constant 0 : index
    %c0_14 = arith.constant 0 : index
    %23 = vector.load %arg6[%c0_13, %c0_14] : memref<16x128xf32, #tpu.memory_space<vmem>>, vector<16x128xf32>
    tpu.vector_store %arg6[%c0_13, %c0_14], %22 {strides = array<i32>} : memref<16x128xf32, #tpu.memory_space<vmem>>, vector<16x128xf32>,
    %c0_i32_15 = arith.constant 0 : i32
    %24 = arith.cmpi eq, %arg1, %c0_i32_15 : i32
    %25 = arith.extui %24 : i1 to i32
    %c0_i32_16 = arith.constant 0 : i32
    %26 = arith.cmpi ne, %25, %c0_i32_16 : i32
    scf.if %26 {
      %c0_17 = arith.constant 0 : index
      %c0_18 = arith.constant 0 : index
      %27 = vector.load %arg6[%c0_17, %c0_18] : memref<16x128xf32, #tpu.memory_space<vmem>>, vector<16x128xf32>
      %c0_19 = arith.constant 0 : index
      %c0_20 = arith.constant 0 : index
      %28 = vector.load %arg5[%c0_19, %c0_20] : memref<16x128xf32, #tpu.memory_space<vmem>>, vector<16x128xf32>
      tpu.vector_store %arg5[%c0_19, %c0_20], %27 {strides = array<i32>} : memref<16x128xf32, #tpu.memory_space<vmem>>, vector<16x128xf32>,
    } else {
    }
    return
  }
  func.func @transform_0(%arg0: i32, %arg1: i32) -> (i32, i32) {
    %c0_i32 = arith.constant 0 : i32
    %c0_i32_0 = arith.constant 0 : i32
    return %arg0, %c0_i32 : i32, i32
  }
  func.func @transform_1(%arg0: i32, %arg1: i32) -> (i32, i32) {
    %c0_i32 = arith.constant 0 : i32
    %c0_i32_0 = arith.constant 0 : i32
    return %c0_i32, %arg1 : i32, i32
  }
  func.func @transform_2(%arg0: i32, %arg1: i32) -> (i32, i32) {
    %c0_i32 = arith.constant 0 : i32
    %c0_i32_0 = arith.constant 0 : i32
    return %arg1, %c0_i32 : i32, i32
  }
  func.func @transform_3(%arg0: i32, %arg1: i32) -> (i32, i32) {
    %c0_i32 = arith.constant 0 : i32
    %c0_i32_0 = arith.constant 0 : i32
    return %arg0, %c0_i32 : i32, i32
  }
}

</mosaic_0001>

<bundles_post_ra>
// kernel: tpu_custom_call.1
= control target key start
LH: loop header
LB: loop body
LE: loop exit
PB: predicated region body
PF: predicated region fallthrough
CT: control target
= control target key end

     0   :  { %8 = vsyncpa [#allocation4], 0  ;;  %s550_s0 = inlined_call_operand.hbm [shape: f32[16,128], index: 0, kind: input, shape index: {}]   ;;  %s551_s1 = inlined_call_operand.hbm [shape: f32[128,256], index: 1, kind: input, shape index: {}]   ;;  %s552_s2 = inlined_call_operand.hbm [shape: f32[256,128], index: 2, kind: input, shape index: {}]   ;;  %s553_s3 = inlined_call_operand.hbm [shape: f32[16,128], index: 3, kind: output, shape index: {}]  }
   0x1   :  { %9 = vsyncpa [#allocation7], 0 }
   0x2   :  { %10 = vsyncpa [#allocation5], 0  ;;  %s490_s12 = smov [#allocation6]  }
   0x3   :  { %s28_s13 = sshll.u32 %s490_s12, 4  ;;  %s29_s13 = int_to_ptr.vmem [resolvable:$true] %s28_s13 }
   0x4   :  { %s412_s14 = scalar_lea.vmem %s29_s13, 4096  ;;  %p417_p1 = scmp.lt.s32.totalorder %s29_s13, %s29_s13 }
   0x5   :  { %p413_p0 = scmp.ne.s32.totalorder %s29_s13, %s412_s14  ;;  %p418_p2 = scmp.lt.s32.totalorder %s412_s14, %s412_s14 }
   0x7   :  { %p419_p3 = por %p418_p2, %p417_p1 }
   0x9   :  { %p420_p4 = pnand %p419_p3, %p413_p0 }
   0xb   :  { %423 = shalt.err (!%p420_p4)
}
   0xc   :  { %s491_s15 = smov 256   ;;  %s492_s16 = smov 16  }
   0xd   :  { %34 = dma.hbm_to_vmem [thread:$0]  %s551_s1, 4096, %s29_s13, [#allocation7], %s491_s15, %s491_s15, %s492_s16  }
   0xe   :  { %s493_s19 = smov [#allocation3]  }
   0xf   :  { %s16_s20 = sshll.u32 %s493_s19, 4  ;;  %s17_s20 = int_to_ptr.vmem [resolvable:$true] %s16_s20 }
  0x10   :  { %s432_s21 = scalar_lea.vmem %s17_s20, 256  ;;  %p437_p6 = scmp.lt.s32.totalorder %s17_s20, %s17_s20 }
  0x11   :  { %p433_p5 = scmp.ne.s32.totalorder %s17_s20, %s432_s21  ;;  %p438_p7 = scmp.lt.s32.totalorder %s432_s21, %s432_s21 }
  0x13   :  { %p439_p8 = por %p438_p7, %p437_p6 }
  0x15   :  { %p440_p9 = pnand %p439_p8, %p433_p5 }
  0x17   :  { %443 = shalt.err (!%p440_p9)
}
  0x18   :  { %s494_s22 = smov 128   ;;  %s495_s23 = smov 8  }
  0x19   :  { %22 = dma.hbm_to_vmem [thread:$0]  %s550_s0, 256, %s17_s20, [#allocation4], %s494_s22, %s494_s22, %s495_s23  }
  0x1a   :  { %s496_s1 = smov [#allocation8]  }
  0x1b   :  { %s40_s26 = sshll.u32 %s496_s1, 4  ;;  %s41_s26 = int_to_ptr.vmem [resolvable:$true] %s40_s26 }
  0x1c   :  { %s452_s27 = scalar_lea.vmem %s41_s26, 4096  ;;  %p457_p11 = scmp.lt.s32.totalorder %s41_s26, %s41_s26 }
  0x1d   :  { %p453_p10 = scmp.ne.s32.totalorder %s41_s26, %s452_s27  ;;  %p458_p12 = scmp.lt.s32.totalorder %s452_s27, %s452_s27 }
  0x1f   :  { %p459_p13 = por %p458_p12, %p457_p11 }
  0x21   :  { %p460_p0 = pnand %p459_p13, %p453_p10 }
  0x23   :  { %463 = shalt.err (!%p460_p0)
}
  0x24   :  { %46 = dma.hbm_to_vmem [thread:$0]  %s552_s2, 4096, %s41_s26, [#allocation7], %s494_s22, %s494_s22, %s495_s23  }
  0x25   :  { %484 = dma.done.wait [#allocation4], 256  }
  0x26   :  { %485 = vsyncadd [#allocation4], 4294967040 }
  0x27   :  { %486 = dma.done.wait [#allocation7], 8192  }
  0x28   :  { %487 = vsyncadd [#allocation7], 4294959104  ;;  %v497_v0 = vmov 0.0   ;;  %v97_v1 = vld [vmem:[#allocation6 + $0xf8] sm:$0xff]  ;;  %v96_v2 = vld [vmem:[#allocation6 + $0xf0] sm:$0xff]  ;;  %s498_s0 = smov [#allocation9]  }
  0x29   :  { %162 = vmatprep.mubr.f32.mxu0 %v497_v0  ;;  %v95_v3 = vld [vmem:[#allocation6 + $0xe8] sm:$0xff]  ;;  %98 = vmatprep.subr.mxu0 %v97_v1  ;;  %v94_v4 = vld [vmem:[#allocation6 + $0xe0] sm:$0xff]  ;;  %v93_v5 = vld [vmem:[#allocation6 + $0xd8] sm:$0xff]  ;;  %s336_s2 = sshll.u32 %s498_s0, 4  ;;  %s337_s2 = int_to_ptr.vmem [resolvable:$true] %s336_s2 }
  0x2a   :  { %99 = vmatpush1.msra.mxu0 %v96_v2  ;;  %v92_v6 = vld [vmem:[#allocation6 + $0xd0] sm:$0xff]  ;;  %v91_v7 = vld [vmem:[#allocation6 + $0xc8] sm:$0xff]  ;;  %v90_v8 = vld [vmem:[#allocation6 + $0xc0] sm:$0xff]  ;;  %s464_s30 = scalar_lea.vmem %s337_s2, 256  ;;  %p469_p2 = scmp.lt.s32.totalorder %s337_s2, %s337_s2 }
  0x2b   :  { %100 = vmatprep.subr.mxu0 %v95_v3  ;;  %v89_v9 = vld [vmem:[#allocation6 + $0xb8] sm:$0xff]  ;;  %v88_v10 = vld [vmem:[#allocation6 + $0xb0] sm:$0xff]  ;;  %v87_v11 = vld [vmem:[#allocation6 + $0xa8] sm:$0xff]  ;;  %p465_p1 = scmp.ne.s32.totalorder %s337_s2, %s464_s30  ;;  %p470_p3 = scmp.lt.s32.totalorder %s464_s30, %s464_s30 }
  0x2c   :  { %101 = vmatpush1.msra.mxu0 %v94_v4  ;;  %v86_v12 = vld [vmem:[#allocation6 + $0xa0] sm:$0xff]  ;;  %v85_v13 = vld [vmem:[#allocation6 + $0x98] sm:$0xff]  ;;  %v84_v14 = vld [vmem:[#allocation6 + $0x90] sm:$0xff] }
  0x2d   :  { %102 = vmatprep.subr.mxu0 %v93_v5  ;;  %v83_v15 = vld [vmem:[#allocation6 + $0x88] sm:$0xff]  ;;  %v82_v16 = vld [vmem:[#allocation6 + $0x80] sm:$0xff]  ;;  %v81_v17 = vld [vmem:[#allocation6 + $0x78] sm:$0xff]  ;;  %p471_p4 = por %p470_p3, %p469_p2 }
  0x2e   :  { %103 = vmatpush1.msra.mxu0 %v92_v6  ;;  %v80_v18 = vld [vmem:[#allocation6 + $0x70] sm:$0xff]  ;;  %v79_v19 = vld [vmem:[#allocation6 + $0x68] sm:$0xff]  ;;  %v78_v20 = vld [vmem:[#allocation6 + $0x60] sm:$0xff] }
  0x2f   :  { %104 = vmatprep.subr.mxu0 %v91_v7  ;;  %v77_v21 = vld [vmem:[#allocation6 + $0x58] sm:$0xff]  ;;  %v76_v22 = vld [vmem:[#allocation6 + $0x50] sm:$0xff]  ;;  %v75_v23 = vld [vmem:[#allocation6 + $0x48] sm:$0xff]  ;;  %p472_p5 = pnand %p471_p4, %p465_p1 }
  0x30   :  { %105 = vmatpush1.msra.mxu0 %v90_v8  ;;  %v74_v24 = vld [vmem:[#allocation6 + $0x40] sm:$0xff]  ;;  %v73_v25 = vld [vmem:[#allocation6 + $0x38] sm:$0xff]  ;;  %v72_v26 = vld [vmem:[#allocation6 + $0x30] sm:$0xff] }
  0x31   :  { %106 = vmatprep.subr.mxu0 %v89_v9  ;;  %v71_v27 = vld [vmem:[#allocation6 + $0x28] sm:$0xff]  ;;  %v70_v28 = vld [vmem:[#allocation6 + $0x20] sm:$0xff]  ;;  %v69_v29 = vld [vmem:[#allocation6 + $0x18] sm:$0xff] }
  0x32   :  { %107 = vmatpush1.msra.mxu0 %v88_v10  ;;  %v68_v30 = vld [vmem:[#allocation6 + $0x10] sm:$0xff]  ;;  %v67_v31 = vld [vmem:[#allocation6 + $0x8] sm:$0xff]  ;;  %v66_v32 = vld [vmem:[#allocation6] sm:$0xff] }
  0x33   :  { %108 = vmatprep.subr.mxu0 %v87_v11  ;;  %v535_v33 = vld [vmem:[#allocation3] sm:$0xff]  ;;  %v539_v34 = vld [vmem:[#allocation3 + $0x8] sm:$0xff]  ;;  %v242_v39 = vld [vmem:[#allocation8 + $0xe8] sm:$0xff] }
  0x34   :  { %109 = vmatpush1.msra.mxu0 %v86_v12  ;;  %v244_v35 = vld [vmem:[#allocation8 + $0xf8] sm:$0xff]  ;;  %v243_v37 = vld [vmem:[#allocation8 + $0xf0] sm:$0xff]  ;;  %v226_v40 = vld [vmem:[#allocation8 + $0x68] sm:$0xff] }
  0x35   :  { %110 = vmatprep.subr.mxu0 %v85_v13  ;;  %349 = vmatprep.subr.mxu1 %v244_v35  ;;  %v228_v36 = vld [vmem:[#allocation8 + $0x78] sm:$0xff]  ;;  %v227_v38 = vld [vmem:[#allocation8 + $0x70] sm:$0xff]  ;;  %v241_v41 = vld [vmem:[#allocation8 + $0xe0] sm:$0xff] }
  0x36   :  { %111 = vmatpush1.msra.mxu0 %v84_v14  ;;  %350 = vmatpush3.msra.mxu1 %v228_v36  ;;  %v225_v42 = vld [vmem:[#allocation8 + $0x60] sm:$0xff]  ;;  %v240_v43 = vld [vmem:[#allocation8 + $0xd8] sm:$0xff]  ;;  %v239_v45 = vld [vmem:[#allocation8 + $0xd0] sm:$0xff] }
  0x37   :  { %112 = vmatprep.subr.mxu0 %v83_v15  ;;  %351 = vmatprep.subr.mxu1 %v243_v37  ;;  %v224_v44 = vld [vmem:[#allocation8 + $0x58] sm:$0xff]  ;;  %v223_v46 = vld [vmem:[#allocation8 + $0x50] sm:$0xff]  ;;  %v238_v47 = vld [vmem:[#allocation8 + $0xc8] sm:$0xff] }
  0x38   :  { %113 = vmatpush1.msra.mxu0 %v82_v16  ;;  %352 = vmatpush3.msra.mxu1 %v227_v38  ;;  %v222_v48 = vld [vmem:[#allocation8 + $0x48] sm:$0xff]  ;;  %v237_v49 = vld [vmem:[#allocation8 + $0xc0] sm:$0xff]  ;;  %v236_v51 = vld [vmem:[#allocation8 + $0xb8] sm:$0xff] }
  0x39   :  { %114 = vmatprep.subr.mxu0 %v81_v17  ;;  %353 = vmatprep.subr.mxu1 %v242_v39  ;;  %v221_v50 = vld [vmem:[#allocation8 + $0x40] sm:$0xff]  ;;  %v220_v52 = vld [vmem:[#allocation8 + $0x38] sm:$0xff]  ;;  %v235_v53 = vld [vmem:[#allocation8 + $0xb0] sm:$0xff] }
  0x3a   :  { %115 = vmatpush1.msra.mxu0 %v80_v18  ;;  %354 = vmatpush3.msra.mxu1 %v226_v40  ;;  %v219_v54 = vld [vmem:[#allocation8 + $0x30] sm:$0xff]  ;;  %v234_v55 = vld [vmem:[#allocation8 + $0xa8] sm:$0xff]  ;;  %v233_v57 = vld [vmem:[#allocation8 + $0xa0] sm:$0xff] }
  0x3b   :  { %116 = vmatprep.subr.mxu0 %v79_v19  ;;  %355 = vmatprep.subr.mxu1 %v241_v41  ;;  %v218_v56 = vld [vmem:[#allocation8 + $0x28] sm:$0xff]  ;;  %v217_v58 = vld [vmem:[#allocation8 + $0x20] sm:$0xff]  ;;  %v232_v59 = vld [vmem:[#allocation8 + $0x98] sm:$0xff] }
  0x3c   :  { %117 = vmatpush1.msra.mxu0 %v78_v20  ;;  %356 = vmatpush3.msra.mxu1 %v225_v42  ;;  %v216_v60 = vld [vmem:[#allocation8 + $0x18] sm:$0xff]  ;;  %v231_v61 = vld [vmem:[#allocation8 + $0x90] sm:$0xff]  ;;  %v230_v63 = vld [vmem:[#allocation8 + $0x88] sm:$0xff] }
  0x3d   :  { %118 = vmatprep.subr.mxu0 %v77_v21  ;;  %357 = vmatprep.subr.mxu1 %v240_v43  ;;  %v215_v62 = vld [vmem:[#allocation8 + $0x10] sm:$0xff]  ;;  %v229_v1 = vld [vmem:[#allocation8 + $0x80] sm:$0xff] }
  0x3e   :  { %119 = vmatpush1.msra.mxu0 %v76_v22  ;;  %358 = vmatpush3.msra.mxu1 %v224_v44  ;;  %v213_v2 = vld [vmem:[#allocation8] sm:$0xff] }
  0x3f   :  { %120 = vmatprep.subr.mxu0 %v75_v23  ;;  %359 = vmatprep.subr.mxu1 %v239_v45 }
  0x40   :  { %121 = vmatpush1.msra.mxu0 %v74_v24  ;;  %360 = vmatpush3.msra.mxu1 %v223_v46 }
  0x41   :  { %122 = vmatprep.subr.mxu0 %v73_v25  ;;  %361 = vmatprep.subr.mxu1 %v238_v47 }
  0x42   :  { %123 = vmatpush1.msra.mxu0 %v72_v26  ;;  %362 = vmatpush3.msra.mxu1 %v222_v48 }
  0x43   :  { %124 = vmatprep.subr.mxu0 %v71_v27  ;;  %363 = vmatprep.subr.mxu1 %v237_v49 }
  0x44   :  { %125 = vmatpush1.msra.mxu0 %v70_v28  ;;  %364 = vmatpush3.msra.mxu1 %v221_v50 }
  0x45   :  { %126 = vmatprep.subr.mxu0 %v69_v29  ;;  %365 = vmatprep.subr.mxu1 %v236_v51 }
  0x46   :  { %127 = vmatpush1.msra.mxu0 %v68_v30  ;;  %366 = vmatpush3.msra.mxu1 %v220_v52 }
  0x47   :  { %128 = vmatprep.subr.mxu0 %v67_v31  ;;  %367 = vmatprep.subr.mxu1 %v235_v53 }
  0x48   :  { %129 = vmatpush1.msra.mxu0 %v66_v32  ;;  %368 = vmatpush3.msra.mxu1 %v219_v54 }
  0x49   :  { %163 = vmatmul.mubr.f32.vlgmr.msra.gmra.mxu0 %v535_v33  ;;  %369 = vmatprep.subr.mxu1 %v234_v55 }
  0x4a   :  { %168 = vmatprep.mubr.f32.mxu0 %v497_v0  ;;  %370 = vmatpush3.msra.mxu1 %v218_v56  ;;  %v214_v0 = vld [vmem:[#allocation8 + $0x8] sm:$0xff] }
  0x4b   :  { %371 = vmatprep.subr.mxu1 %v233_v57 }
  0x4c   :  { %372 = vmatpush3.msra.mxu1 %v217_v58 }
  0x4d   :  { %169 = vmatmul.mubr.f32.gmra.mxu0 %v539_v34  ;;  %373 = vmatprep.subr.mxu1 %v232_v59 }
  0x4e   :  { %374 = vmatpush3.msra.mxu1 %v216_v60 }
  0x4f   :  { %375 = vmatprep.subr.mxu1 %v231_v61 }
  0x50   :  { %376 = vmatpush3.msra.mxu1 %v215_v62 }
  0x51   :  { %377 = vmatprep.subr.mxu1 %v230_v63 }
  0x52   :  { %378 = vmatpush3.msra.mxu1 %v214_v0 }
  0x53   :  { %379 = vmatprep.subr.mxu1 %v229_v1 }
  0x54   :  { %380 = vmatpush3.msra.mxu1 %v213_v2 }
 0x109   :  { %v164_v3 = vpop.f32.mrf.mxu0 }
 0x10a   :  { %v175_v4 = vmul.f32 %v164_v3, %v164_v3 }
 0x10b   :  { %v166_v5 = vpop.f32.mrf.mxu0 }
 0x10c   :  { %v179_v6 = vmul.f32 %v175_v4, %v164_v3  ;;  %v176_v7 = vmul.f32 %v166_v5, %v166_v5 }
 0x10d   :  { %v170_v8 = vpop.f32.mrf.mxu0 }
 0x10e   :  { %v183_v9 = vmul.f32 0.044715, %v179_v6  ;;  %v180_v10 = vmul.f32 %v176_v7, %v166_v5  ;;  %v177_v11 = vmul.f32 %v170_v8, %v170_v8 }
 0x10f   :  { %v172_v12 = vpop.f32.mrf.mxu0 }
 0x110   :  { %v187_v13 = vadd.f32 %v183_v9, %v164_v3  ;;  %v184_v14 = vmul.f32 0.044715, %v180_v10  ;;  %v181_v15 = vmul.f32 %v177_v11, %v170_v8  ;;  %v178_v16 = vmul.f32 %v172_v12, %v172_v12 }
 0x112   :  { %v191_v17 = vmul.f32 0.7978846, %v187_v13  ;;  %v188_v18 = vadd.f32 %v184_v14, %v166_v5  ;;  %v185_v19 = vmul.f32 0.044715, %v181_v15  ;;  %v182_v20 = vmul.f32 %v178_v16, %v172_v12 }
 0x114   :  { %396 = vtanh.f32 %v191_v17  ;;  %v192_v21 = vmul.f32 0.7978846, %v188_v18  ;;  %v189_v22 = vadd.f32 %v185_v19, %v170_v8  ;;  %v186_v23 = vmul.f32 0.044715, %v182_v20 }
 0x116   :  { %v193_v24 = vmul.f32 0.7978846, %v189_v22  ;;  %v190_v25 = vadd.f32 %v186_v23, %v172_v12  ;;  %398 = vtanh.f32 %v192_v21 }
 0x118   :  { %400 = vtanh.f32 %v193_v24  ;;  %v194_v26 = vmul.f32 0.7978846, %v190_v25 }
 0x11a   :  { %402 = vtanh.f32 %v194_v26 }
 0x121   :  { %v397_v27 = vpop.eup %396 }
 0x122   :  { %v199_v28 = vadd.f32 1.0, %v397_v27 }
 0x123   :  { %v399_v29 = vpop.eup %398 }
 0x124   :  { %v200_v30 = vadd.f32 1.0, %v399_v29  ;;  %v203_v32 = vmul.f32 0.5, %v199_v28 }
 0x125   :  { %v401_v31 = vpop.eup %400 }
 0x126   :  { %v204_v35 = vmul.f32 0.5, %v200_v30  ;;  %v201_v36 = vadd.f32 1.0, %v401_v31  ;;  %v207_v40 = vmul.f32 %v203_v32, %v164_v3 }
 0x127   :  { %v403_v37 = vpop.eup %402 }
 0x128   :  { %v202_v38 = vadd.f32 1.0, %v403_v37  ;;  %v208_v39 = vmul.f32 %v204_v35, %v166_v5  ;;  %v205_v41 = vmul.f32 0.5, %v201_v36 }
 0x12a   :  { %v206_v42 = vmul.f32 0.5, %v202_v38  ;;  %309 = vmatprep.mubr.f32.mxu1 %v208_v39  ;;  %v209_v44 = vmul.f32 %v205_v41, %v170_v8 }
 0x12b   :  { %310 = vmatmul.mubr.f32.vlgmr.msra.gmra.mxu1 %v207_v40 }
 0x12c   :  { %v210_v43 = vmul.f32 %v206_v42, %v172_v12 }
 0x12e   :  { %314 = vmatprep.mubr.f32.mxu1 %v210_v43 }
 0x12f   :  { %315 = vmatmul.mubr.f32.gmra.mxu1 %v209_v44 }
 0x1eb   :  { %v381_v45 = vpop.f32.mrf.mxu1 }
 0x1ed   :  { %v382_v46 = vpop.f32.mrf.mxu1 }
 0x1ee   :  { %v383_v47 = vadd.f32 %v382_v46, %v381_v45 }
 0x1ef   :  { %v384_v48 = vpop.f32.mrf.mxu1 }
 0x1f0   :  { %v320_v49 = vadd.f32 %v383_v47, %v535_v33 }
 0x1f1   :  { %v385_v50 = vpop.f32.mrf.mxu1 }
 0x1f2   :  { %329 = vst [vmem:[#allocation9] sm:$0xff] %v320_v49  ;;  %v386_v51 = vadd.f32 %v385_v50, %v384_v48 }
 0x1f4   :  { %v321_v52 = vadd.f32 %v386_v51, %v539_v34 }
 0x1f6   :  { %330 = vst [vmem:[#allocation9 + $0x8] sm:$0xff] %v321_v52 }
 0x1f7   :  { %475 = shalt.err (!%p472_p5)
}
 0x1f8   :  { %342 = dma.vmem_to_hbm [thread:$0]  %s337_s2, 256, %s553_s3, [#allocation5], %s494_s22, %s494_s22, %s495_s23  }
 0x1f9   :  { %488 = dma.done.wait [#allocation5], 256  }
 0x1fa   :  { %489 = vsyncadd [#allocation5], 4294967040 }
 0x1fb   :  { %346 = vsyncpa [#allocation4], 1 }
 0x1fc   :  { %347 = vsyncpa [#allocation7], 1 }
 0x1fd   :  { %348 = vsyncpa [#allocation5], 1 }

</bundles_post_ra>
